<compile_context>
chip_gen: v5e
topology: v5e:2x2
jax: 0.10.0
libtpu: 0.0.40
codegen_flags: <defaults>
</compile_context>

<pallas_src>
import functools

import jax
import jax.numpy as jnp
from jax.experimental import pallas as pl
from jax.experimental.pallas import tpu as pltpu

FRAME_DIM = 128          # matches the PyTorch default
HIDDEN = 256
IN_DIM = FRAME_DIM * 2
DEFAULT_TILE_B = 2048    # rows per grid step (amortizes ~0.35 us/step overhead)
VMEM_LIMIT_BYTES = 48 * 1024 * 1024


def _round_up(n, m):
    return ((n + m - 1) // m) * m


def ae_kernel(x_ref,
              w1_ref, b1_ref, w2_ref, b2_ref,
              w3_ref, b3_ref, w4_ref, b4_ref,
              xrec_ref, z_ref):
    # x arrives as bf16 (cast in the wrapper); MXU runs bf16 x bf16 -> f32.
    x = x_ref[...]

    # ---- encoder ----
    h1 = jnp.dot(x, w1_ref[...], preferred_element_type=jnp.float32) + b1_ref[...]
    h1 = jnp.maximum(h1, 0.0)                                    # ReLU (f32, VPU)
    z = jnp.dot(h1.astype(jnp.bfloat16), w2_ref[...],
                preferred_element_type=jnp.float32) + b2_ref[...]
    z_ref[...] = z.astype(z_ref.dtype)

    # ---- decoder ----
    h2 = jnp.dot(z.astype(jnp.bfloat16), w3_ref[...],
                 preferred_element_type=jnp.float32) + b3_ref[...]
    h2 = jnp.maximum(h2, 0.0)                                    # ReLU (f32, VPU)
    y = jnp.dot(h2.astype(jnp.bfloat16), w4_ref[...],
                preferred_element_type=jnp.float32) + b4_ref[...]
    xrec_ref[...] = jax.nn.sigmoid(y).astype(xrec_ref.dtype)     # Sigmoid (f32, EUP)


@functools.partial(jax.jit, static_argnames=("tile_b",))
def ae_forward(x, params, *, tile_b=DEFAULT_TILE_B):
    """x: (B, 2*frame_dim) float.  params: dict of transposed weights/biases.

    Returns (x_rec, z) in float32 (matching the PyTorch module's interface)."""
    B = x.shape[0]

    # Stream the input as bf16 (no-op if the caller already supplies bf16).
    x = x.astype(jnp.bfloat16)

    # ---- batch-tile selection ----
    # Multiple of 16 rows (bf16 sublane packing); never wider than the batch.
    tb = min(int(tile_b), _round_up(B, 16))
    tb = max(16, _round_up(tb, 16))
    # Keep >= 2 grid steps on large batches so both v7x TensorCores get work.
    if B >= 256 and pl.cdiv(B, tb) < 2:
        tb = max(16, _round_up(pl.cdiv(B, 2), 16))
    grid = pl.cdiv(B, tb)   # ragged last block is masked on write -> no padding

    # Weights bf16 (halves resident VMEM / DMA bytes); biases stay f32.
    # (astype is a no-op under jit if prepare_params() already cast them.)
    w1 = params["w1"].astype(jnp.bfloat16)
    w2 = params["w2"].astype(jnp.bfloat16)
    w3 = params["w3"].astype(jnp.bfloat16)
    w4 = params["w4"].astype(jnp.bfloat16)
    b1, b2, b3, b4 = params["b1"], params["b2"], params["b3"], params["b4"]

    # Weights/biases: full block, constant index_map -> VMEM-resident across grid.
    resident = lambda a: pl.BlockSpec(a.shape, lambda i: (0,) * a.ndim)

    x_rec, z = pl.pallas_call(
        ae_kernel,
        out_shape=(
            jax.ShapeDtypeStruct((B, IN_DIM), jnp.float32),      # x_rec
            jax.ShapeDtypeStruct((B, FRAME_DIM), jnp.float32),   # z
        ),
        grid_spec=pl.GridSpec(
            grid=(grid,),
            in_specs=[
                pl.BlockSpec((tb, IN_DIM), lambda i: (i, 0)),    # x (streamed bf16)
                resident(w1), resident(b1),
                resident(w2), resident(b2),
                resident(w3), resident(b3),
                resident(w4), resident(b4),
            ],
            out_specs=(
                pl.BlockSpec((tb, IN_DIM), lambda i: (i, 0)),     # x_rec
                pl.BlockSpec((tb, FRAME_DIM), lambda i: (i, 0)),  # z
            ),
        ),
        compiler_params=pltpu.CompilerParams(
            dimension_semantics=("parallel",),
            vmem_limit_bytes=VMEM_LIMIT_BYTES,
        ),
    )(x, w1, b1, w2, b2, w3, b3, w4, b4)

    return x_rec, z


def prepare_params(params):
    """Pre-cast weights to bf16 once (outside the per-call path); biases f32."""
    out = dict(params)
    for k in ("w1", "w2", "w3", "w4"):
        out[k] = params[k].astype(jnp.bfloat16)
    return out


def init_params(key):
    """Deterministic parameter init (PyTorch-like uniform fan-in scaling).

    Weights are stored already transposed: (in_features, out_features)."""
    ks = jax.random.split(key, 8)

    def lin(kw, kb, fan_in, fan_out):
        bound = 1.0 / jnp.sqrt(fan_in)
        w = jax.random.uniform(kw, (fan_in, fan_out), jnp.float32, -bound, bound)
        b = jax.random.uniform(kb, (1, fan_out), jnp.float32, -bound, bound)
        return w, b

    w1, b1 = lin(ks[0], ks[1], IN_DIM, HIDDEN)       # encoder.0
    w2, b2 = lin(ks[2], ks[3], HIDDEN, FRAME_DIM)    # encoder.2
    w3, b3 = lin(ks[4], ks[5], FRAME_DIM, HIDDEN)    # decoder.0
    w4, b4 = lin(ks[6], ks[7], HIDDEN, IN_DIM)       # decoder.2
    return dict(w1=w1, b1=b1, w2=w2, b2=b2, w3=w3, b3=b3, w4=w4, b4=b4)


def reference_forward(x, p):
    """Pure-JAX f32 reference (matches the PyTorch module semantics)."""
    h1 = jnp.maximum(x @ p["w1"] + p["b1"], 0.0)
    z = h1 @ p["w2"] + p["b2"]
    h2 = jnp.maximum(z @ p["w3"] + p["b3"], 0.0)
    x_rec = jax.nn.sigmoid(h2 @ p["w4"] + p["b4"])
    return x_rec, z


if __name__ == "__main__":
    key = jax.random.PRNGKey(0)
    k_x, k_p = jax.random.split(key)

    # Small demo batch; tile_b=16 exercises grid > 1 plus a ragged last block
    # (24 = 16 + 8 valid rows; the masked tail is dropped on write).
    B = 24
    x = jax.random.normal(k_x, (B, IN_DIM), jnp.float32)
    params_f32 = init_params(k_p)
    params = prepare_params(params_f32)   # one-time bf16 weight cast

    x_rec, z = ae_forward(x, params, tile_b=16)
    jax.block_until_ready((x_rec, z))

    # sanity check against pure-JAX f32 reference (bf16 MXU I/O -> relaxed tol)
    x_rec_ref, z_ref = reference_forward(x, params_f32)
    assert x_rec.shape == (B, IN_DIM) and z.shape == (B, FRAME_DIM)
    assert jnp.allclose(z, z_ref, atol=5e-2, rtol=5e-2)
    assert jnp.allclose(x_rec, x_rec_ref, atol=5e-2, rtol=5e-2)

    print("KERNEL_OK")
</pallas_src>

<mosaic_0001>
module attributes {stable_mosaic.version = 11 : i64} {
  func.func @ae_kernel(%arg0: i32, %arg1: memref<16x256xbf16, #tpu.memory_space<vmem>>, %arg2: memref<256x256xbf16, #tpu.memory_space<vmem>>, %arg3: memref<1x256xf32, #tpu.memory_space<vmem>>, %arg4: memref<256x128xbf16, #tpu.memory_space<vmem>>, %arg5: memref<1x128xf32, #tpu.memory_space<vmem>>, %arg6: memref<128x256xbf16, #tpu.memory_space<vmem>>, %arg7: memref<1x256xf32, #tpu.memory_space<vmem>>, %arg8: memref<256x256xbf16, #tpu.memory_space<vmem>>, %arg9: memref<1x256xf32, #tpu.memory_space<vmem>>, %arg10: memref<16x256xf32, #tpu.memory_space<vmem>>, %arg11: memref<16x128xf32, #tpu.memory_space<vmem>>) attributes {dimension_semantics = [#tpu.dimension_semantics<parallel>], iteration_bounds = array<i64: 2>, scalar_prefetch = 0 : i64, scratch_operands = 0 : i64, tpu.core_type = #tpu.core_type<tc>, window_params = [{transform_indices = @transform_0, window_bounds = array<i64: 16, 256>}, {pipeline_mode = #tpu.pipeline_mode<synchronous>, transform_indices = @transform_1, window_bounds = array<i64: 256, 256>}, {pipeline_mode = #tpu.pipeline_mode<synchronous>, transform_indices = @transform_2, window_bounds = array<i64: 1, 256>}, {pipeline_mode = #tpu.pipeline_mode<synchronous>, transform_indices = @transform_3, window_bounds = array<i64: 256, 128>}, {pipeline_mode = #tpu.pipeline_mode<synchronous>, transform_indices = @transform_4, window_bounds = array<i64: 1, 128>}, {pipeline_mode = #tpu.pipeline_mode<synchronous>, transform_indices = @transform_5, window_bounds = array<i64: 128, 256>}, {pipeline_mode = #tpu.pipeline_mode<synchronous>, transform_indices = @transform_6, window_bounds = array<i64: 1, 256>}, {pipeline_mode = #tpu.pipeline_mode<synchronous>, transform_indices = @transform_7, window_bounds = array<i64: 256, 256>}, {pipeline_mode = #tpu.pipeline_mode<synchronous>, transform_indices = @transform_8, window_bounds = array<i64: 1, 256>}, {transform_indices = @transform_9, window_bounds = array<i64: 16, 256>}, {transform_indices = @transform_10, window_bounds = array<i64: 16, 128>}]} {
    %c0 = arith.constant 0 : index
    %c0_0 = arith.constant 0 : index
    %0 = vector.load %arg1[%c0, %c0_0] : memref<16x256xbf16, #tpu.memory_space<vmem>>, vector<16x256xbf16>
    %c0_1 = arith.constant 0 : index
    %c0_2 = arith.constant 0 : index
    %1 = vector.load %arg2[%c0_1, %c0_2] : memref<256x256xbf16, #tpu.memory_space<vmem>>, vector<256x256xbf16>
    %cst = arith.constant dense<0.000000e+00> : vector<16x256xf32>
    %2 = tpu.matmul %0, %1, %cst {dimension_numbers = #tpu.dot_dimension_numbers<[1], [0], [0], [1], [0, 0, 1, 1], [], []>} : vector<16x256xbf16>, vector<256x256xbf16>, vector<16x256xf32> -> vector<16x256xf32>
    %c0_3 = arith.constant 0 : index
    %c0_4 = arith.constant 0 : index
    %3 = vector.load %arg3[%c0_3, %c0_4] : memref<1x256xf32, #tpu.memory_space<vmem>>, vector<1x256xf32>
    %4 = vector.broadcast %3 : vector<1x256xf32> to vector<16x256xf32>
    %5 = arith.addf %2, %4 : vector<16x256xf32>
    %cst_5 = arith.constant 0.000000e+00 : f32
    %6 = vector.broadcast %cst_5 : f32 to vector<16x256xf32>
    %7 = arith.maximumf %5, %6 : vector<16x256xf32>
    %8 = arith.truncf %7 : vector<16x256xf32> to vector<16x256xbf16>
    %c0_6 = arith.constant 0 : index
    %c0_7 = arith.constant 0 : index
    %9 = vector.load %arg4[%c0_6, %c0_7] : memref<256x128xbf16, #tpu.memory_space<vmem>>, vector<256x128xbf16>
    %cst_8 = arith.constant dense<0.000000e+00> : vector<16x128xf32>
    %10 = tpu.matmul %8, %9, %cst_8 {dimension_numbers = #tpu.dot_dimension_numbers<[1], [0], [0], [1], [0, 0, 1, 1], [], []>} : vector<16x256xbf16>, vector<256x128xbf16>, vector<16x128xf32> -> vector<16x128xf32>
    %c0_9 = arith.constant 0 : index
    %c0_10 = arith.constant 0 : index
    %11 = vector.load %arg5[%c0_9, %c0_10] : memref<1x128xf32, #tpu.memory_space<vmem>>, vector<1x128xf32>
    %12 = vector.broadcast %11 : vector<1x128xf32> to vector<16x128xf32>
    %13 = arith.addf %10, %12 : vector<16x128xf32>
    %c0_11 = arith.constant 0 : index
    %c0_12 = arith.constant 0 : index
    %14 = vector.load %arg11[%c0_11, %c0_12] : memref<16x128xf32, #tpu.memory_space<vmem>>, vector<16x128xf32>
    tpu.vector_store %arg11[%c0_11, %c0_12], %13 {strides = array<i32>} : memref<16x128xf32, #tpu.memory_space<vmem>>, vector<16x128xf32>,
    %15 = arith.truncf %13 : vector<16x128xf32> to vector<16x128xbf16>
    %c0_13 = arith.constant 0 : index
    %c0_14 = arith.constant 0 : index
    %16 = vector.load %arg6[%c0_13, %c0_14] : memref<128x256xbf16, #tpu.memory_space<vmem>>, vector<128x256xbf16>
    %cst_15 = arith.constant dense<0.000000e+00> : vector<16x256xf32>
    %17 = tpu.matmul %15, %16, %cst_15 {dimension_numbers = #tpu.dot_dimension_numbers<[1], [0], [0], [1], [0, 0, 1, 1], [], []>} : vector<16x128xbf16>, vector<128x256xbf16>, vector<16x256xf32> -> vector<16x256xf32>
    %c0_16 = arith.constant 0 : index
    %c0_17 = arith.constant 0 : index
    %18 = vector.load %arg7[%c0_16, %c0_17] : memref<1x256xf32, #tpu.memory_space<vmem>>, vector<1x256xf32>
    %19 = vector.broadcast %18 : vector<1x256xf32> to vector<16x256xf32>
    %20 = arith.addf %17, %19 : vector<16x256xf32>
    %cst_18 = arith.constant 0.000000e+00 : f32
    %21 = vector.broadcast %cst_18 : f32 to vector<16x256xf32>
    %22 = arith.maximumf %20, %21 : vector<16x256xf32>
    %23 = arith.truncf %22 : vector<16x256xf32> to vector<16x256xbf16>
    %c0_19 = arith.constant 0 : index
    %c0_20 = arith.constant 0 : index
    %24 = vector.load %arg8[%c0_19, %c0_20] : memref<256x256xbf16, #tpu.memory_space<vmem>>, vector<256x256xbf16>
    %cst_21 = arith.constant dense<0.000000e+00> : vector<16x256xf32>
    %25 = tpu.matmul %23, %24, %cst_21 {dimension_numbers = #tpu.dot_dimension_numbers<[1], [0], [0], [1], [0, 0, 1, 1], [], []>} : vector<16x256xbf16>, vector<256x256xbf16>, vector<16x256xf32> -> vector<16x256xf32>
    %c0_22 = arith.constant 0 : index
    %c0_23 = arith.constant 0 : index
    %26 = vector.load %arg9[%c0_22, %c0_23] : memref<1x256xf32, #tpu.memory_space<vmem>>, vector<1x256xf32>
    %27 = vector.broadcast %26 : vector<1x256xf32> to vector<16x256xf32>
    %28 = arith.addf %25, %27 : vector<16x256xf32>
    %29 = arith.negf %28 : vector<16x256xf32>
    %30 = math.exp %29 : vector<16x256xf32>
    %cst_24 = arith.constant 1.000000e+00 : f32
    %31 = vector.broadcast %cst_24 : f32 to vector<16x256xf32>
    %32 = arith.addf %31, %30 : vector<16x256xf32>
    %33 = arith.divf %31, %32 : vector<16x256xf32>
    %c0_25 = arith.constant 0 : index
    %c0_26 = arith.constant 0 : index
    %34 = vector.load %arg10[%c0_25, %c0_26] : memref<16x256xf32, #tpu.memory_space<vmem>>, vector<16x256xf32>
    tpu.vector_store %arg10[%c0_25, %c0_26], %33 {strides = array<i32>} : memref<16x256xf32, #tpu.memory_space<vmem>>, vector<16x256xf32>,
    return
  }
  func.func @transform_0(%arg0: i32) -> (i32, i32) {
    %c0_i32 = arith.constant 0 : i32
    %c0_i32_0 = arith.constant 0 : i32
    return %arg0, %c0_i32 : i32, i32
  }
  func.func @transform_1(%arg0: i32) -> (i32, i32) {
    %c0_i32 = arith.constant 0 : i32
    %c0_i32_0 = arith.constant 0 : i32
    %c0_i32_1 = arith.constant 0 : i32
    return %c0_i32, %c0_i32_0 : i32, i32
  }
  func.func @transform_2(%arg0: i32) -> (i32, i32) {
    %c0_i32 = arith.constant 0 : i32
    %c0_i32_0 = arith.constant 0 : i32
    %c0_i32_1 = arith.constant 0 : i32
    return %c0_i32, %c0_i32_0 : i32, i32
  }
  func.func @transform_3(%arg0: i32) -> (i32, i32) {
    %c0_i32 = arith.constant 0 : i32
    %c0_i32_0 = arith.constant 0 : i32
    %c0_i32_1 = arith.constant 0 : i32
    return %c0_i32, %c0_i32_0 : i32, i32
  }
  func.func @transform_4(%arg0: i32) -> (i32, i32) {
    %c0_i32 = arith.constant 0 : i32
    %c0_i32_0 = arith.constant 0 : i32
    %c0_i32_1 = arith.constant 0 : i32
    return %c0_i32, %c0_i32_0 : i32, i32
  }
  func.func @transform_5(%arg0: i32) -> (i32, i32) {
    %c0_i32 = arith.constant 0 : i32
    %c0_i32_0 = arith.constant 0 : i32
    %c0_i32_1 = arith.constant 0 : i32
    return %c0_i32, %c0_i32_0 : i32, i32
  }
  func.func @transform_6(%arg0: i32) -> (i32, i32) {
    %c0_i32 = arith.constant 0 : i32
    %c0_i32_0 = arith.constant 0 : i32
    %c0_i32_1 = arith.constant 0 : i32
    return %c0_i32, %c0_i32_0 : i32, i32
  }
  func.func @transform_7(%arg0: i32) -> (i32, i32) {
    %c0_i32 = arith.constant 0 : i32
    %c0_i32_0 = arith.constant 0 : i32
    %c0_i32_1 = arith.constant 0 : i32
    return %c0_i32, %c0_i32_0 : i32, i32
  }
  func.func @transform_8(%arg0: i32) -> (i32, i32) {
    %c0_i32 = arith.constant 0 : i32
    %c0_i32_0 = arith.constant 0 : i32
    %c0_i32_1 = arith.constant 0 : i32
    return %c0_i32, %c0_i32_0 : i32, i32
  }
  func.func @transform_9(%arg0: i32) -> (i32, i32) {
    %c0_i32 = arith.constant 0 : i32
    %c0_i32_0 = arith.constant 0 : i32
    return %arg0, %c0_i32 : i32, i32
  }
  func.func @transform_10(%arg0: i32) -> (i32, i32) {
    %c0_i32 = arith.constant 0 : i32
    %c0_i32_0 = arith.constant 0 : i32
    return %arg0, %c0_i32 : i32, i32
  }
}

</mosaic_0001>

<bundles_post_ra>
// kernel: ae_forward.1
= control target key start
LH: loop header
LB: loop body
LE: loop exit
PB: predicated region body
PF: predicated region fallthrough
CT: control target
= control target key end

     0   :  { %s2775_s0 = inlined_call_operand.vmem [shape: bf16[24,256], index: 0, kind: input, shape index: {}]   ;;  %s2776_s1 = inlined_call_operand.hbm [shape: bf16[256,256], index: 1, kind: input, shape index: {}]   ;;  %s2777_s2 = inlined_call_operand.vmem [shape: f32[1,256], index: 2, kind: input, shape index: {}]   ;;  %s2778_s3 = inlined_call_operand.hbm [shape: bf16[256,128], index: 3, kind: input, shape index: {}]   ;;  %s2779_s4 = inlined_call_operand.vmem [shape: f32[1,128], index: 4, kind: input, shape index: {}]   ;;  %s2780_s5 = inlined_call_operand.hbm [shape: bf16[128,256], index: 5, kind: input, shape index: {}]   ;;  %s2781_s6 = inlined_call_operand.vmem [shape: f32[1,256], index: 6, kind: input, shape index: {}]   ;;  %s2782_s7 = inlined_call_operand.hbm [shape: bf16[256,256], index: 7, kind: input, shape index: {}]   ;;  %s2783_s8 = inlined_call_operand.vmem [shape: f32[1,256], index: 8, kind: input, shape index: {}]   ;;  %s2784_s9 = inlined_call_operand.hbm [shape: f32[24,256], index: 9, kind: output, shape index: {0}]   ;;  %s2785_s10 = inlined_call_operand.hbm [shape: f32[24,128], index: 10, kind: output, shape index: {1}]  }
   0x1   :  { %2793 = sst [smem:[#allocation23_spill]] %s2776_s1 }
   0x2   :  { %2794 = sst [smem:[#allocation24_spill]] %s2778_s3 }
   0x3   :  { %16 = vsyncpa [#allocation3], 0 }
   0x4   :  { %17 = vsyncpa [#allocation6], 0 }
   0x5   :  { %18 = vsyncpa [#allocation9], 0 }
   0x6   :  { %19 = vsyncpa [#allocation4], 0 }
   0x7   :  { %21 = vsyncpa [#allocation4 + $0x1], 0 }
   0x8   :  { %22 = vsyncpa [#allocation12], 0 }
   0x9   :  { %24 = vsyncpa [#allocation12 + $0x1], 0  ;;  %s2533_s13 = smov 0   ;;  %s2535_s14 = smov 0  }
   0xa   :  { %s2537_s15 = smov 0   ;;  %s2539_s16 = smov 0  }
   0xb LB: > { %2795 = sst [smem:[#allocation18_spill]] %s2450_s13  ;;  %s2554_s17 = sadd.s32 4294967295, %s2462_s16   ;;  %s2462_s16 = sphi %s2539_s16, %s2814_s16   ;;  %s2458_s15 = sphi %s2537_s15, %s2816_s15   ;;  %s2454_s14 = sphi %s2535_s14, %s2818_s14   ;;  %s2450_s13 = sphi %s2533_s13, %s2817_s13  }
   0xc   : > { %2796 = sst [smem:[#allocation19_spill]] %s2458_s15  ;;  %s1572_s18 = sadd.s32 4294967294, %s2462_s16  }
   0xd   : > { %s2558_s19 = sadd.s32 1, %s2462_s16   ;;  %s231_s20 = sadd.s32 1, %s2458_s15 }
   0xe   : > { %2797 = sst [smem:[#allocation20_spill]] %s2558_s19  ;;  %s228_s21 = ssub.s32 %s2462_s16, %s2558_s19 }
   0xf   : > { %p241_p0 = scmp.ne.s32.totalorder %s2458_s15, %s2454_s14  ;;  %p229_p1 = scmp.eq.s32.totalorder %s228_s21, 0 }
  0x10   : > { %p242_p2 = scmp.eq.s32.totalorder %s2554_s17, 1  ;;  %p247_p3 = scmp.ne.s32.totalorder %s2454_s14, %s2450_s13 }
  0x11   : > { %p248_p4 = scmp.eq.s32.totalorder %s1572_s18, 1  ;;  %p1573_p7 = scmp.ge.s32.totalorder %s2462_s16, 1 }
  0x12   : > { %s2569_s22 = scalar_select %p229_p1, %s2458_s15, %s231_s20  }
  0x13   : > { %p2571_p5 = por %p242_p2, %p241_p0  ;;  %p2575_p6 = por %p248_p4, %p247_p3 }
  0x14   : > { %2798 = sst [smem:[#allocation21_spill]] %s2569_s22  ;;  %p281_p8 = scmp.lt.s32.totalorder %s2462_s16, 3 }
  0x15   : > { %s2800_s24 = scalar_select %p2575_p6, 1, 0 }
  0x16   : > { %p2144_p9 = scmp.eq.s32.totalorder %s2554_s17, 0  ;;  %p2582_p10 = pnand %p1573_p7, %p281_p8 }
  0x17   : > { %2801 = sst [smem:[#allocation22_spill]] %s2800_s24  ;;  %s2464_s29 = smov [#allocation5]  }
  0x18   : > { %s2803_s3 = sld [smem:[#allocation24_spill]]  ;;  %p2124_p11 = pneg %p2582_p10 }
  0x19   : > { %s311_s30 = sshll.u32 %s2464_s29, 4  ;;  %s2805_s1 = sld [smem:[#allocation23_spill]]  ;;  %s312_s30 = int_to_ptr.vmem [resolvable:$true] %s311_s30 }
  0x1a   : > { %p2593_p12 = pnand %p2144_p9, %p2124_p11  ;;  %s2465_s21 = smov 64  }
  0x1b   : > { %s2466_s26 = smov 4   ;;  %s2467_s27 = smov [#allocation2]  }
  0x1c   : > { %s294_s29 = sshll.u32 %s2467_s27, 4  ;;  %s2469_s22 = smov 8   ;;  %s295_s29 = int_to_ptr.vmem [resolvable:$true] %s294_s29 }
  0x1d   : > { %s326_s12 = sshll.u32 %s2780_s5, 4  ;;  %s2470_s18 = smov [#allocation7]   ;;  %s327_s12 = int_to_ptr.hbm [resolvable:$true] %s326_s12 }
  0x1e   : > { %s309_s28 = sshll.u32 %s2803_s3, 4  ;;  %s2468_s3 = smov 128   ;;  %s310_s28 = int_to_ptr.hbm [resolvable:$true] %s309_s28 }
  0x1f   : > { %s292_s20 = sshll.u32 %s2805_s1, 4  ;;  %s328_s1 = sshll.u32 %s2470_s18, 4  ;;  %s293_s20 = int_to_ptr.hbm [resolvable:$true] %s292_s20  ;;  %s329_s1 = int_to_ptr.vmem [resolvable:$true] %s328_s1 }
  0x20   : > { %2130 = dma.hbm_to_vmem [thread:$0]  (!%p2593_p12), %s310_s28, 2048, %s312_s30, [#allocation6], %s2465_s21, %s2465_s21, %s2466_s26  }
  0x21   : > { %2127 = dma.hbm_to_vmem [thread:$0]  (!%p2593_p12), %s293_s20, 4096, %s295_s29, [#allocation3], %s2468_s3, %s2468_s3, %s2469_s22  }
  0x22   : > { %s343_s28 = sshll.u32 %s2782_s7, 4  ;;  %s2471_s30 = smov [#allocation8]   ;;  %s344_s28 = int_to_ptr.hbm [resolvable:$true] %s343_s28 }
  0x23   : > { %2133 = dma.hbm_to_vmem [thread:$0]  (!%p2593_p12), %s327_s12, 2048, %s329_s1, [#allocation6], %s2468_s3, %s2468_s3, %s2469_s22  }
  0x24   : > { %s345_s21 = sshll.u32 %s2471_s30, 4  ;;  %384 = sbr.rel (%p2582_p10) target bundleno = 761 (0x2f9), region = 56  ;;  %s346_s21 = int_to_ptr.vmem [resolvable:$true] %s345_s21 }
  0x25   : > { %2136 = dma.hbm_to_vmem [thread:$0]  (!%p2593_p12), %s344_s28, 4096, %s346_s21, [#allocation9], %s2468_s3, %s2468_s3, %s2469_s22  }
  0x29   : > { %2429 = dma.done.wait (%p2144_p9), [#allocation3], 4096  }
  0x2a   : > { %2431 = vsyncadd (%p2144_p9), [#allocation3], 4294963200 }
  0x2b   : > { %2433 = dma.done.wait (%p2144_p9), [#allocation6], 4096  }
  0x2c   : > { %2435 = vsyncadd (%p2144_p9), [#allocation6], 4294963200 }
  0x2d   : > { %2437 = dma.done.wait (%p2144_p9), [#allocation9], 4096  }
  0x2e   : > { %2439 = vsyncadd (%p2144_p9), [#allocation9], 4294963200  ;;  %s2629_s1 = sshll.u32 %s2554_s17, 1  ;;  %v1655_v0 = vld [vmem:[#allocation2 + $0x70] sm:$0xf]  ;;  %s2645_s11 = sand.u32 1, %s2454_s14  }
  0x2f   : > { %v2021_v1 = vld [vmem:[#allocation2 + $0x74] sm:$0xf0]  ;;  %v1719_v2 = vld [vmem:[#allocation2 + $0xf0] sm:$0xf]  ;;  %v2020_v5 = vld [vmem:[#allocation2 + $0x74] sm:$0xf] }
  0x30   : > { %v1656_v3 = vor.u32 %v2021_v1, %v1655_v0  ;;  %v2037_v4 = vld [vmem:[#allocation2 + $0xf4] sm:$0xf0]  ;;  %v1657_v6 = vld [vmem:[#allocation2 + $0x78] sm:$0xf0]  ;;  %v2036_v9 = vld [vmem:[#allocation2 + $0xf4] sm:$0xf] }
  0x31   : > { %v1720_v7 = vor.u32 %v2037_v4, %v1719_v2  ;;  %v1660_v8 = vor.u32 %v2020_v5, %v1657_v6  ;;  %v1721_v10 = vld [vmem:[#allocation2 + $0xf8] sm:$0xf0]  ;;  %v1647_v11 = vld [vmem:[#allocation2 + $0x60] sm:$0xf]  ;;  %v2019_v13 = vld [vmem:[#allocation2 + $0x64] sm:$0xf0] }
  0x32   : > { %687 = vmatpush.bf16.msra.mxu0 %v1656_v3  ;;  %v1724_v12 = vor.u32 %v2036_v9, %v1721_v10  ;;  %v1711_v14 = vld [vmem:[#allocation2 + $0xe0] sm:$0xf]  ;;  %v2035_v15 = vld [vmem:[#allocation2 + $0xe4] sm:$0xf0]  ;;  %v1648_v16 = vor.u32 %v2019_v13, %v1647_v11  ;;  %v2018_v18 = vld [vmem:[#allocation2 + $0x64] sm:$0xf] }
  0x33   : > { %701 = vmatpush.bf16.msra.mxu1 %v1720_v7  ;;  %715 = vmatpush.bf16.msra.mxu2 %v1660_v8  ;;  %v1712_v17 = vor.u32 %v2035_v15, %v1711_v14  ;;  %v1649_v19 = vld [vmem:[#allocation2 + $0x68] sm:$0xf0]  ;;  %v2034_v20 = vld [vmem:[#allocation2 + $0xe4] sm:$0xf]  ;;  %v1639_v23 = vld [vmem:[#allocation2 + $0x50] sm:$0xf] }
  0x34   : > { %729 = vmatpush.bf16.msra.mxu3 %v1724_v12  ;;  %v1652_v21 = vor.u32 %v2018_v18, %v1649_v19  ;;  %v1713_v22 = vld [vmem:[#allocation2 + $0xe8] sm:$0xf0]  ;;  %v2017_v24 = vld [vmem:[#allocation2 + $0x54] sm:$0xf0]  ;;  %v1703_v26 = vld [vmem:[#allocation2 + $0xd0] sm:$0xf] }
  0x35   : > { %v1716_v25 = vor.u32 %v2034_v20, %v1713_v22  ;;  %v2033_v27 = vld [vmem:[#allocation2 + $0xd4] sm:$0xf0]  ;;  %v2016_v28 = vld [vmem:[#allocation2 + $0x54] sm:$0xf]  ;;  %v1640_v29 = vor.u32 %v2017_v24, %v1639_v23  ;;  %v1641_v30 = vld [vmem:[#allocation2 + $0x58] sm:$0xf0] }
  0x36   : > { %688 = vmatpush.bf16.msra.mxu0 %v1648_v16  ;;  %v2032_v31 = vld [vmem:[#allocation2 + $0xd4] sm:$0xf]  ;;  %v1705_v32 = vld [vmem:[#allocation2 + $0xd8] sm:$0xf0]  ;;  %v1704_v33 = vor.u32 %v2033_v27, %v1703_v26  ;;  %v1644_v34 = vor.u32 %v2016_v28, %v1641_v30  ;;  %v1631_v35 = vld [vmem:[#allocation2 + $0x40] sm:$0xf] }
  0x37   : > { %702 = vmatpush.bf16.msra.mxu1 %v1712_v17  ;;  %716 = vmatpush.bf16.msra.mxu2 %v1652_v21  ;;  %v2015_v36 = vld [vmem:[#allocation2 + $0x44] sm:$0xf0]  ;;  %v1695_v37 = vld [vmem:[#allocation2 + $0xc0] sm:$0xf]  ;;  %v1708_v38 = vor.u32 %v2032_v31, %v1705_v32  ;;  %v2014_v40 = vld [vmem:[#allocation2 + $0x44] sm:$0xf] }
  0x38   : > { %730 = vmatpush.bf16.msra.mxu3 %v1716_v25  ;;  %v2031_v39 = vld [vmem:[#allocation2 + $0xc4] sm:$0xf0]  ;;  %v1633_v41 = vld [vmem:[#allocation2 + $0x48] sm:$0xf0]  ;;  %v2030_v42 = vld [vmem:[#allocation2 + $0xc4] sm:$0xf]  ;;  %v1632_v44 = vor.u32 %v2015_v36, %v1631_v35 }
  0x39   : > { %v1697_v43 = vld [vmem:[#allocation2 + $0xc8] sm:$0xf0]  ;;  %p455_p13 = scmp.lt.s32.totalorder %s2629_s1, 2  ;;  %v1696_v45 = vor.u32 %v2031_v39, %v1695_v37  ;;  %v1636_v46 = vor.u32 %v2014_v40, %v1633_v41  ;;  %v1623_v47 = vld [vmem:[#allocation2 + $0x30] sm:$0xf]  ;;  %v2045_v36 = vld [vmem:[#allocation5 + $0x38] sm:$0xff] }
  0x3a   : > { %689 = vmatpush.bf16.msra.mxu0 %v1640_v29  ;;  %v2013_v48 = vld [vmem:[#allocation2 + $0x34] sm:$0xf0]  ;;  %v1687_v49 = vld [vmem:[#allocation2 + $0xb0] sm:$0xf]  ;;  %v1700_v50 = vor.u32 %v2030_v42, %v1697_v43  ;;  %v2012_v52 = vld [vmem:[#allocation2 + $0x34] sm:$0xf] }
  0x3b   : > { %703 = vmatpush.bf16.msra.mxu1 %v1704_v33  ;;  %717 = vmatpush.bf16.msra.mxu2 %v1644_v34  ;;  %v2029_v51 = vld [vmem:[#allocation2 + $0xb4] sm:$0xf0]  ;;  %v1625_v53 = vld [vmem:[#allocation2 + $0x38] sm:$0xf0]  ;;  %v2028_v54 = vld [vmem:[#allocation2 + $0xb4] sm:$0xf]  ;;  %v1624_v56 = vor.u32 %v2013_v48, %v1623_v47 }
  0x3c   : > { %731 = vmatpush.bf16.msra.mxu3 %v1708_v38  ;;  %v1689_v55 = vld [vmem:[#allocation2 + $0xb8] sm:$0xf0]  ;;  %s2635_s3 = scalar_select %p455_p13, %s2629_s1, 2  ;;  %v1688_v57 = vor.u32 %v2029_v51, %v1687_v49  ;;  %v1628_v58 = vor.u32 %v2012_v52, %v1625_v53  ;;  %v1615_v59 = vld [vmem:[#allocation2 + $0x20] sm:$0xf]  ;;  %v2044_v40 = vld [vmem:[#allocation5 + $0x30] sm:$0xff] }
  0x3d   : > { %v2011_v60 = vld [vmem:[#allocation2 + $0x24] sm:$0xf0]  ;;  %v1679_v61 = vld [vmem:[#allocation2 + $0xa0] sm:$0xf]  ;;  %v1692_v62 = vor.u32 %v2028_v54, %v1689_v55  ;;  %v2010_v0 = vld [vmem:[#allocation2 + $0x24] sm:$0xf] }
  0x3e   : > { %690 = vmatpush.bf16.msra.mxu0 %v1632_v44  ;;  %v2027_v63 = vld [vmem:[#allocation2 + $0xa4] sm:$0xf0]  ;;  %v1617_v1 = vld [vmem:[#allocation2 + $0x28] sm:$0xf0]  ;;  %v2026_v2 = vld [vmem:[#allocation2 + $0xa4] sm:$0xf]  ;;  %v1616_v4 = vor.u32 %v2011_v60, %v1615_v59 }
  0x3f   : > { %704 = vmatpush.bf16.msra.mxu1 %v1696_v45  ;;  %718 = vmatpush.bf16.msra.mxu2 %v1636_v46  ;;  %v1681_v3 = vld [vmem:[#allocation2 + $0xa8] sm:$0xf0]  ;;  %s2003_s13 = sshll.u32 %s2635_s3, 3  ;;  %v1680_v5 = vor.u32 %v2027_v63, %v1679_v61  ;;  %v1620_v6 = vor.u32 %v2010_v0, %v1617_v1  ;;  %v1607_v7 = vld [vmem:[#allocation2 + $0x10] sm:$0xf]  ;;  %v2053_v38 = vld [vmem:[#allocation5 + $0x78] sm:$0xff] }
  0x40   : > { %732 = vmatpush.bf16.msra.mxu3 %v1700_v50  ;;  %v2009_v8 = vld [vmem:[#allocation2 + $0x14] sm:$0xf0]  ;;  %v1671_v9 = vld [vmem:[#allocation2 + $0x90] sm:$0xf]  ;;  %v1684_v10 = vor.u32 %v2026_v2, %v1681_v3  ;;  %v2008_v12 = vld [vmem:[#allocation2 + $0x14] sm:$0xf]  ;;  %s459_s22 = scalar_lea.vmem %s2775_s0, %s2003_s13 }
  0x41   : > { %v2025_v11 = vld [vmem:[#allocation2 + $0x94] sm:$0xf0]  ;;  %v1609_v13 = vld [vmem:[#allocation2 + $0x18] sm:$0xf0]  ;;  %v2024_v14 = vld [vmem:[#allocation2 + $0x94] sm:$0xf]  ;;  %v1608_v16 = vor.u32 %v2009_v8, %v1607_v7 }
  0x42   : > { %691 = vmatpush.bf16.msra.mxu0 %v1624_v56  ;;  %v1673_v15 = vld [vmem:[#allocation2 + $0x98] sm:$0xf0]  ;;  %v1599_v17 = vld [vmem:[#allocation2] sm:$0xf]  ;;  %v1672_v18 = vor.u32 %v2025_v11, %v1671_v9  ;;  %v1612_v19 = vor.u32 %v2008_v12, %v1609_v13  ;;  %v2007_v20 = vld [vmem:[#allocation2 + $0x4] sm:$0xf0] }
  0x43   : > { %705 = vmatpush.bf16.msra.mxu1 %v1688_v57  ;;  %719 = vmatpush.bf16.msra.mxu2 %v1628_v58  ;;  %v1663_v21 = vld [vmem:[#allocation2 + $0x80] sm:$0xf]  ;;  %v2023_v22 = vld [vmem:[#allocation2 + $0x84] sm:$0xf0]  ;;  %v1676_v23 = vor.u32 %v2024_v14, %v1673_v15  ;;  %v2006_v24 = vld [vmem:[#allocation2 + $0x4] sm:$0xf]  ;;  %v1600_v28 = vor.u32 %v2007_v20, %v1599_v17 }
  0x44   : > { %733 = vmatpush.bf16.msra.mxu3 %v1692_v62  ;;  %v1601_v25 = vld [vmem:[#allocation2 + $0x8] sm:$0xf0]  ;;  %v2022_v26 = vld [vmem:[#allocation2 + $0x84] sm:$0xf]  ;;  %v1591_v29 = vld [vmem:[%s459_s22] sm:$0xf]  ;;  %v1664_v31 = vor.u32 %v2023_v22, %v1663_v21 }
  0x45   : > { %v1665_v27 = vld [vmem:[#allocation2 + $0x88] sm:$0xf0]  ;;  %v2005_v30 = vld [vmem:[%s459_s22 + $0x4] sm:$0xf0]  ;;  %v1604_v32 = vor.u32 %v2006_v24, %v1601_v25  ;;  %v2004_v33 = vld [vmem:[%s459_s22 + $0x4] sm:$0xf] }
  0x46   : > { %692 = vmatpush.bf16.msra.mxu0 %v1616_v4  ;;  %v1593_v34 = vld [vmem:[%s459_s22 + $0x8] sm:$0xf0]  ;;  %v1668_v35 = vor.u32 %v2022_v26, %v1665_v27  ;;  %v1592_v37 = vor.u32 %v2005_v30, %v1591_v29  ;;  %v2052_v41 = vld [vmem:[#allocation5 + $0x70] sm:$0xff]  ;;  %v2042_v43 = vld [vmem:[#allocation5 + $0x20] sm:$0xff]  ;;  %s1585_s27 = sshll.u32 %s2645_s11, 4  ;;  %s1584_s21 = sshll.u32 %s2645_s11, 5 }
  0x47   : > { %706 = vmatpush.bf16.msra.mxu1 %v1680_v5  ;;  %720 = vmatpush.bf16.msra.mxu2 %v1620_v6  ;;  %v1596_v39 = vor.u32 %v2004_v33, %v1593_v34  ;;  %v2043_v42 = vld [vmem:[#allocation5 + $0x28] sm:$0xff]  ;;  %v2041_v45 = vld [vmem:[#allocation5 + $0x18] sm:$0xff]  ;;  %v2050_v46 = vld [vmem:[#allocation5 + $0x60] sm:$0xff]  ;;  %s2651_s29 = scalar_lea.vmem [#allocation11], %s1585_s27  ;;  %s2662_s3 = scalar_lea.vmem [#allocation10], %s1584_s21 }
  0x48   : > { %734 = vmatpush.bf16.msra.mxu3 %v1684_v10  ;;  %v2051_v44 = vld [vmem:[#allocation5 + $0x68] sm:$0xff]  ;;  %v2040_v47 = vld [vmem:[#allocation5 + $0x10] sm:$0xff]  ;;  %v2049_v48 = vld [vmem:[#allocation5 + $0x58] sm:$0xff]  ;;  %s2792_s13 = scalar_lea.sflag [#allocation4], %s2645_s11  ;;  %s1396_s19 = ssub.s32 (%p2571_p5), 3, %s2629_s1 }
  0x49   : > { %v2039_v49 = vld [vmem:[#allocation5 + $0x8] sm:$0xff]  ;;  %v2048_v50 = vld [vmem:[#allocation5 + $0x50] sm:$0xff]  ;;  %v2038_v51 = vld [vmem:[#allocation5] sm:$0xff]  ;;  %p1397_p0 = scmp.lt.s32.totalorder (%p2571_p5), %s1396_s19, 2 }
  0x4a   : > { %693 = vmatpush.bf16.msra.mxu0 %v1608_v16  ;;  %v2047_v52 = vld [vmem:[#allocation5 + $0x48] sm:$0xff]  ;;  %v2046_v53 = vld [vmem:[#allocation5 + $0x40] sm:$0xff]  ;;  %v1847_v54 = vld [vmem:[#allocation7 + $0x70] sm:$0xf] }
  0x4b   : > { %707 = vmatpush.bf16.msra.mxu1 %v1672_v18  ;;  %721 = vmatpush.bf16.msra.mxu2 %v1612_v19  ;;  %v2069_v55 = vld [vmem:[#allocation7 + $0x74] sm:$0xf0]  ;;  %v2068_v56 = vld [vmem:[#allocation7 + $0x74] sm:$0xf]  ;;  %v1849_v58 = vld [vmem:[#allocation7 + $0x78] sm:$0xf0] }
  0x4c   : > { %735 = vmatpush.bf16.msra.mxu3 %v1676_v23  ;;  %v1848_v57 = vor.u32 %v2069_v55, %v1847_v54  ;;  %v1839_v59 = vld [vmem:[#allocation7 + $0x60] sm:$0xf]  ;;  %v2067_v60 = vld [vmem:[#allocation7 + $0x64] sm:$0xf0]  ;;  %v1852_v61 = vor.u32 %v2068_v56, %v1849_v58  ;;  %v2066_v62 = vld [vmem:[#allocation7 + $0x64] sm:$0xf] }
  0x4d   : > { %v1841_v63 = vld [vmem:[#allocation7 + $0x68] sm:$0xf0]  ;;  %v1840_v0 = vor.u32 %v2067_v60, %v1839_v59  ;;  %v1831_v2 = vld [vmem:[#allocation7 + $0x50] sm:$0xf]  ;;  %v2065_v3 = vld [vmem:[#allocation7 + $0x54] sm:$0xf0] }
  0x4e   : > { %694 = vmatpush.bf16.msra.mxu0 %v1600_v28  ;;  %v1844_v1 = vor.u32 %v2066_v62, %v1841_v63  ;;  %v2064_v4 = vld [vmem:[#allocation7 + $0x54] sm:$0xf]  ;;  %v1833_v5 = vld [vmem:[#allocation7 + $0x58] sm:$0xf0]  ;;  %v511_v6 = vld [vmem:[%s2777_s2] sm:$0x3]  ;;  %v1832_v7 = vor.u32 %v2065_v3, %v1831_v2 }
  0x4f   : > { %708 = vmatpush.bf16.msra.mxu1 %v1664_v31  ;;  %722 = vmatpush.bf16.msra.mxu2 %v1604_v32  ;;  %v1836_v9 = vor.u32 %v2064_v4, %v1833_v5  ;;  %v513_v10 = vperm.slane %v511_v6, 0  ;;  %v514_v14 = vperm.slane %v511_v6, 1  ;;  %v1823_v33 = vld [vmem:[#allocation7 + $0x40] sm:$0xf]  ;;  %v2063_v34 = vld [vmem:[#allocation7 + $0x44] sm:$0xf0] }
  0x50   : > { %736 = vmatpush.bf16.msra.mxu3 %v1668_v35  ;;  %v2062_v35 = vld [vmem:[#allocation7 + $0x44] sm:$0xf]  ;;  %v1801_v55 = vld [vmem:[#allocation7 + $0x18] sm:$0xf0]  ;;  %v2055_v58 = vld [vmem:[#allocation7 + $0x4] sm:$0xf0] }
  0x51   : > { %695 = vmatmul.bf16.vlgmr.msra.gmra.mxu0 %v1592_v37  ;;  %v2054_v59 = vld [vmem:[#allocation7 + $0x4] sm:$0xf]  ;;  %v1911_v63 = vld [vmem:[#allocation8 + $0x70] sm:$0xf]  ;;  %v2101_v3 = vld [vmem:[#allocation8 + $0xf4] sm:$0xf0] }
  0x52   : > { %881 = vmatpush.bf16.msrb.mxu0 %v2045_v36  ;;  %709 = vmatmul.bf16.vlgmr.msra.gmra.mxu1 %v1596_v39  ;;  %v1824_v36 = vor.u32 %v2063_v34, %v1823_v33  ;;  %v2084_v4 = vld [vmem:[#allocation8 + $0x74] sm:$0xf]  ;;  %v1913_v5 = vld [vmem:[#allocation8 + $0x78] sm:$0xf0]  ;;  %v1887_v34 = vld [vmem:[#allocation8 + $0x40] sm:$0xf] }
  0x53   : > { %895 = vmatpush.bf16.msrb.mxu1 %v2053_v38  ;;  %723 = vmatmul.bf16.vlgmr.msra.gmra.mxu2 %v1592_v37  ;;  %v1825_v37 = vld [vmem:[#allocation7 + $0x48] sm:$0xf0] }
  0x54   : > { %737 = vmatmul.bf16.vlgmr.msra.gmra.mxu3 %v1596_v39  ;;  %1014 = vmatpush.bf16.msrb.mxu2 %v1848_v57  ;;  %v1828_v38 = vor.u32 %v2062_v35, %v1825_v37  ;;  %v1815_v39 = vld [vmem:[#allocation7 + $0x30] sm:$0xf]  ;;  %v1791_v57 = vld [vmem:[#allocation7] sm:$0xf]  ;;  %v2079_v35 = vld [vmem:[#allocation8 + $0x44] sm:$0xf0] }
  0x55   : > { %1028 = vmatpush.bf16.msrb.mxu3 %v1852_v61  ;;  %v1792_v60 = vor.u32 %v2055_v58, %v1791_v57  ;;  %v1793_v61 = vld [vmem:[#allocation7 + $0x8] sm:$0xf0]  ;;  %v1879_v57 = vld [vmem:[#allocation8 + $0x30] sm:$0xf]  ;;  %v2077_v58 = vld [vmem:[#allocation8 + $0x34] sm:$0xf0] }
  0x56   : > { %882 = vmatpush.bf16.msrb.mxu0 %v2044_v40  ;;  %v2061_v40 = vld [vmem:[#allocation7 + $0x34] sm:$0xf0]  ;;  %v1796_v62 = vor.u32 %v2054_v59, %v1793_v61  ;;  %v1943_v59 = vld [vmem:[#allocation8 + $0xb0] sm:$0xf] }
  0x57   : > { %896 = vmatpush.bf16.msrb.mxu1 %v2052_v41  ;;  %v2060_v41 = vld [vmem:[#allocation7 + $0x34] sm:$0xf]  ;;  %v2093_v61 = vld [vmem:[#allocation8 + $0xb4] sm:$0xf0] }
  0x58   : > { %1015 = vmatpush.bf16.msrb.mxu2 %v1840_v0  ;;  %v2085_v0 = vld [vmem:[#allocation8 + $0x74] sm:$0xf0] }
  0x59   : > { %1029 = vmatpush.bf16.msrb.mxu3 %v1844_v1  ;;  %v1975_v1 = vld [vmem:[#allocation8 + $0xf0] sm:$0xf]  ;;  %v1912_v2 = vor.u32 %v2085_v0, %v1911_v63  ;;  %v1881_v63 = vld [vmem:[#allocation8 + $0x38] sm:$0xf0]  ;;  %v1944_v0 = vor.u32 %v2093_v61, %v1943_v59 }
  0x5a   : > { %883 = vmatpush.bf16.msrb.mxu0 %v2043_v42  ;;  %v1816_v42 = vor.u32 %v2061_v40, %v1815_v39  ;;  %v1976_v6 = vor.u32 %v2101_v3, %v1975_v1  ;;  %v2078_v39 = vld [vmem:[#allocation8 + $0x44] sm:$0xf]  ;;  %v1889_v40 = vld [vmem:[#allocation8 + $0x48] sm:$0xf0]  ;;  %v1945_v3 = vld [vmem:[#allocation8 + $0xb8] sm:$0xf0] }
  0x5b   : > { %897 = vmatpush.bf16.msrb.mxu1 %v2051_v44 }
  0x5c   : > { %1016 = vmatpush.bf16.msrb.mxu2 %v1832_v7  ;;  %v1916_v7 = vor.u32 %v2084_v4, %v1913_v5  ;;  %v1871_v5 = vld [vmem:[#allocation8 + $0x20] sm:$0xf] }
  0x5d   : > { %1030 = vmatpush.bf16.msrb.mxu3 %v1836_v9  ;;  %v1977_v9 = vld [vmem:[#allocation8 + $0xf8] sm:$0xf0] }
  0x5e   : > { %884 = vmatpush.bf16.msrb.mxu0 %v2042_v43  ;;  %v1817_v43 = vld [vmem:[#allocation7 + $0x38] sm:$0xf0] }
  0x5f   : > { %898 = vmatpush.bf16.msrb.mxu1 %v2050_v46  ;;  %v1820_v44 = vor.u32 %v2060_v41, %v1817_v43  ;;  %v2059_v46 = vld [vmem:[#allocation7 + $0x24] sm:$0xf0]  ;;  %v2094_v41 = vld [vmem:[#allocation8 + $0xc4] sm:$0xf]  ;;  %v1888_v43 = vor.u32 %v2079_v35, %v1887_v34  ;;  %v1857_v35 = vld [vmem:[#allocation8 + $0x8] sm:$0xf0] }
  0x60   : > { %1017 = vmatpush.bf16.msrb.mxu2 %v1824_v36  ;;  %v1951_v36 = vld [vmem:[#allocation8 + $0xc0] sm:$0xf]  ;;  %v2070_v34 = vld [vmem:[#allocation8 + $0x4] sm:$0xf] }
  0x61   : > { %1031 = vmatpush.bf16.msrb.mxu3 %v1828_v38  ;;  %v2095_v38 = vld [vmem:[#allocation8 + $0xc4] sm:$0xf0] }
  0x62   : > { %885 = vmatpush.bf16.msrb.mxu0 %v2041_v45  ;;  %v1807_v45 = vld [vmem:[#allocation7 + $0x20] sm:$0xf] }
  0x63   : > { %899 = vmatpush.bf16.msrb.mxu1 %v2049_v48  ;;  %v1808_v48 = vor.u32 %v2059_v46, %v1807_v45  ;;  %v1892_v45 = vor.u32 %v2078_v39, %v1889_v40  ;;  %v1921_v39 = vld [vmem:[#allocation8 + $0x88] sm:$0xf0] }
  0x64   : > { %1018 = vmatpush.bf16.msrb.mxu2 %v1816_v42  ;;  %v1953_v42 = vld [vmem:[#allocation8 + $0xc8] sm:$0xf0] }
  0x65   : > { %1032 = vmatpush.bf16.msrb.mxu3 %v1820_v44  ;;  %v1952_v44 = vor.u32 %v2095_v38, %v1951_v36  ;;  %v2086_v38 = vld [vmem:[#allocation8 + $0x84] sm:$0xf] }
  0x66   : > { %886 = vmatpush.bf16.msrb.mxu0 %v2040_v47  ;;  %v2058_v47 = vld [vmem:[#allocation7 + $0x24] sm:$0xf]  ;;  %v1924_v40 = vor.u32 %v2086_v38, %v1921_v39 }
  0x67   : > { %900 = vmatpush.bf16.msrb.mxu1 %v2048_v50 }
  0x68   : > { %1019 = vmatpush.bf16.msrb.mxu2 %v1808_v48  ;;  %v2197_v48 = vld [vmem:[%s2779_s4] ss:$0 sm:$0xff] }
  0x6a   : > { %887 = vmatpush.bf16.msrb.mxu0 %v2039_v49  ;;  %v1809_v49 = vld [vmem:[#allocation7 + $0x28] sm:$0xf0] }
  0x6b   : > { %901 = vmatpush.bf16.msrb.mxu1 %v2047_v52  ;;  %v1812_v50 = vor.u32 %v2058_v47, %v1809_v49  ;;  %v2057_v52 = vld [vmem:[#allocation7 + $0x14] sm:$0xf0]  ;;  %v1956_v47 = vor.u32 %v2094_v41, %v1953_v42  ;;  %v928_v41 = vld [vmem:[%s2781_s6] sm:$0x3] }
  0x6d   : > { %1033 = vmatpush.bf16.msrb.mxu3 %v1812_v50 }
  0x6e   : > { %888 = vmatpush.bf16.msrb.mxu0 %v2038_v51  ;;  %v1799_v51 = vld [vmem:[#allocation7 + $0x10] sm:$0xf] }
  0x6f   : > { %902 = vmatpush.bf16.msrb.mxu1 %v2046_v53  ;;  %v2056_v53 = vld [vmem:[#allocation7 + $0x14] sm:$0xf]  ;;  %v1800_v54 = vor.u32 %v2057_v52, %v1799_v51 }
  0x70   : > { %v1804_v56 = vor.u32 %v2056_v53, %v1801_v55 }
  0x71   : > { %1020 = vmatpush.bf16.msrb.mxu2 %v1800_v54 }
  0x72   : > { %1034 = vmatpush.bf16.msrb.mxu3 %v1804_v56  ;;  %1246 = vmatpush.bf16.msra.mxu0 %v1912_v2  ;;  %v2092_v2 = vld [vmem:[#allocation8 + $0xb4] sm:$0xf] }
  0x73   : > { %1260 = vmatpush.bf16.msra.mxu1 %v1976_v6  ;;  %v1948_v4 = vor.u32 %v2092_v2, %v1945_v3  ;;  %v2075_v6 = vld [vmem:[#allocation8 + $0x24] sm:$0xf0] }
  0x75   : > { %1021 = vmatpush.bf16.msrb.mxu2 %v1792_v60  ;;  %v1880_v60 = vor.u32 %v2077_v58, %v1879_v57  ;;  %v1080_v58 = vld [vmem:[%s2783_s8] sm:$0x3] }
  0x76   : > { %1035 = vmatpush.bf16.msrb.mxu3 %v1796_v62  ;;  %v2076_v62 = vld [vmem:[#allocation8 + $0x34] sm:$0xf]  ;;  %v1082_v59 = vperm.slane %v1080_v58, 0 }
  0x77   : > { %v1884_v1 = vor.u32 %v2076_v62, %v1881_v63 }
  0x79   : > { %1274 = vmatpush.bf16.msra.mxu2 %v1916_v7  ;;  %v1935_v7 = vld [vmem:[#allocation8 + $0xa0] sm:$0xf] }
  0xce   : > { %v696_v8 = vpop.f32.mrf.mxu0 }
  0xcf   : > { %v710_v11 = vpop.f32.mrf.mxu1  ;;  %v697_v12 = vadd.f32 %v696_v8, %v513_v10  ;;  %v2100_v8 = vld [vmem:[#allocation8 + $0xf4] sm:$0xf] }
  0xd1   : > { %v711_v17 = vadd.f32 %v710_v11, %v697_v12  ;;  %v1980_v11 = vor.u32 %v2100_v8, %v1977_v9  ;;  %v2083_v12 = vld [vmem:[#allocation8 + $0x64] sm:$0xf0]  ;;  %v1872_v8 = vor.u32 %v2075_v6, %v1871_v5 }
  0xd2   : > { %v2091_v9 = vld [vmem:[#allocation8 + $0xa4] sm:$0xf0] }
  0xd3   : > { %v743_v22 = vmax.f32 %v711_v17, 0.0  ;;  %v2082_v17 = vld [vmem:[#allocation8 + $0x64] sm:$0xf]  ;;  %1288 = vmatpush.bf16.msra.mxu3 %v1980_v11  ;;  %v1873_v11 = vld [vmem:[#allocation8 + $0x28] sm:$0xf0] }
  0xd6   : > { %v724_v13 = vpop.f32.mrf.mxu2  ;;  %v698_v16 = vpop.f32.mrf.mxu0 }
  0xd7   : > { %v738_v15 = vpop.f32.mrf.mxu3  ;;  %v699_v18 = vadd.f32 %v698_v16, %v513_v10  ;;  %v712_v19 = vpop.f32.mrf.mxu1  ;;  %v725_v21 = vadd.f32 %v724_v13, %v514_v14  ;;  %v1903_v10 = vld [vmem:[#allocation8 + $0x60] sm:$0xf] }
  0xd8   : > { %v1967_v13 = vld [vmem:[#allocation8 + $0xe0] sm:$0xf] }
  0xd9   : > { %v713_v20 = vadd.f32 %v712_v19, %v699_v18  ;;  %v739_v26 = vadd.f32 %v738_v15, %v725_v21  ;;  %v1904_v15 = vor.u32 %v2083_v12, %v1903_v10  ;;  %v1905_v18 = vld [vmem:[#allocation8 + $0x68] sm:$0xf0]  ;;  %v2098_v19 = vld [vmem:[#allocation8 + $0xe4] sm:$0xf]  ;;  %v1936_v12 = vor.u32 %v2091_v9, %v1935_v7 }
  0xda   : > { %v1969_v21 = vld [vmem:[#allocation8 + $0xe8] sm:$0xf0]  ;;  %v2074_v10 = vld [vmem:[#allocation8 + $0x24] sm:$0xf] }
  0xdb   : > { %v745_v23 = vmax.f32 %v713_v20, 0.0  ;;  %v744_v30 = vmax.f32 %v739_v26, 0.0  ;;  %v1908_v20 = vor.u32 %v2082_v17, %v1905_v18  ;;  %v2097_v26 = vld [vmem:[#allocation8 + $0xd4] sm:$0xf0]  ;;  %1247 = vmatpush.bf16.msra.mxu0 %v1904_v15  ;;  %v1937_v15 = vld [vmem:[#allocation8 + $0xa8] sm:$0xf0] }
  0xdc   : > { %v1863_v17 = vld [vmem:[#allocation8 + $0x10] sm:$0xf]  ;;  %v2073_v18 = vld [vmem:[#allocation8 + $0x14] sm:$0xf0] }
  0xdd   : > { %v747_v24 = vpack.c.bf16 %v745_v23, %v743_v22  ;;  %v1895_v22 = vld [vmem:[#allocation8 + $0x50] sm:$0xf]  ;;  %v2081_v23 = vld [vmem:[#allocation8 + $0x54] sm:$0xf0]  ;;  %1275 = vmatpush.bf16.msra.mxu2 %v1908_v20  ;;  %v1864_v20 = vor.u32 %v2073_v18, %v1863_v17 }
  0xde   : > { %v726_v25 = vpop.f32.mrf.mxu2 }
  0xdf   : > { %v727_v27 = vadd.f32 %v726_v25, %v514_v14  ;;  %v740_v28 = vpop.f32.mrf.mxu3  ;;  %889 = vmatmul.bf16.vlgmr.msrb.gmra.mxu0 %v747_v24  ;;  %v2099_v14 = vld [vmem:[#allocation8 + $0xe4] sm:$0xf0]  ;;  %v1972_v24 = vor.u32 %v2098_v19, %v1969_v21  ;;  %v1959_v25 = vld [vmem:[#allocation8 + $0xd0] sm:$0xf]  ;;  %v2089_v21 = vld [vmem:[#allocation8 + $0x94] sm:$0xf0] }
  0xe0   : > { %v1968_v16 = vor.u32 %v2099_v14, %v1967_v13  ;;  %v1876_v13 = vor.u32 %v2074_v10, %v1873_v11  ;;  %v2090_v14 = vld [vmem:[#allocation8 + $0xa4] sm:$0xf]  ;;  %v1927_v19 = vld [vmem:[#allocation8 + $0x90] sm:$0xf] }
  0xe1   : > { %v741_v29 = vadd.f32 %v740_v28, %v727_v27  ;;  %v2080_v27 = vld [vmem:[#allocation8 + $0x54] sm:$0xf]  ;;  %v1896_v28 = vor.u32 %v2081_v23, %v1895_v22  ;;  %1289 = vmatpush.bf16.msra.mxu3 %v1972_v24  ;;  %v1865_v23 = vld [vmem:[#allocation8 + $0x18] sm:$0xf0]  ;;  %v1928_v24 = vor.u32 %v2089_v21, %v1927_v19 }
  0xe2   : > { %1261 = vmatpush.bf16.msra.mxu1 %v1968_v16  ;;  %v1940_v16 = vor.u32 %v2090_v14, %v1937_v15  ;;  %v2072_v22 = vld [vmem:[#allocation8 + $0x14] sm:$0xf] }
  0xe3   : > { %v746_v31 = vmax.f32 %v741_v29, 0.0  ;;  %v1897_v29 = vld [vmem:[#allocation8 + $0x58] sm:$0xf0]  ;;  %1248 = vmatpush.bf16.msra.mxu0 %v1896_v28 }
  0xe4   : > { %v1900_v33 = vor.u32 %v2080_v27, %v1897_v29  ;;  %v1929_v27 = vld [vmem:[#allocation8 + $0x98] sm:$0xf0]  ;;  %v1855_v29 = vld [vmem:[#allocation8] sm:$0xf] }
  0xe5   : > { %v748_v32 = vpack.c.bf16 %v746_v31, %v744_v30  ;;  %v2096_v30 = vld [vmem:[#allocation8 + $0xd4] sm:$0xf]  ;;  %v1961_v31 = vld [vmem:[#allocation8 + $0xd8] sm:$0xf0] }
  0xe6   : > { %v1964_v37 = vor.u32 %v2096_v30, %v1961_v31  ;;  %1276 = vmatpush.bf16.msra.mxu2 %v1900_v33  ;;  %v2071_v30 = vld [vmem:[#allocation8 + $0x4] sm:$0xf0]  ;;  %v1919_v31 = vld [vmem:[#allocation8 + $0x80] sm:$0xf] }
  0xe7   : > { %903 = vmatmul.bf16.vlgmr.msrb.gmra.mxu1 %v748_v32  ;;  %v1960_v32 = vor.u32 %v2097_v26, %v1959_v25  ;;  %1249 = vmatpush.bf16.msra.mxu0 %v1888_v43  ;;  %v1868_v25 = vor.u32 %v2072_v22, %v1865_v23  ;;  %v2088_v26 = vld [vmem:[#allocation8 + $0x94] sm:$0xf]  ;;  %v2087_v33 = vld [vmem:[#allocation8 + $0x84] sm:$0xf0] }
  0xe8   : > { %1290 = vmatpush.bf16.msra.mxu3 %v1964_v37  ;;  %v1932_v28 = vor.u32 %v2088_v26, %v1929_v27  ;;  %v1920_v36 = vor.u32 %v2087_v33, %v1919_v31  ;;  %v1860_v37 = vor.u32 %v2070_v34, %v1857_v35 }
  0xe9   : > { %1262 = vmatpush.bf16.msra.mxu1 %v1960_v32  ;;  %v1856_v32 = vor.u32 %v2071_v30, %v1855_v29 }
  0xea   : > { %1277 = vmatpush.bf16.msra.mxu2 %v1892_v45  ;;  %v931_v45 = vperm.slane %v928_v41, 1 }
  0xeb   : > { %1250 = vmatpush.bf16.msra.mxu0 %v1880_v60 }
  0xec   : > { %1291 = vmatpush.bf16.msra.mxu3 %v1956_v47 }
  0xed   : > { %1263 = vmatpush.bf16.msra.mxu1 %v1952_v44  ;;  %v930_v44 = vperm.slane %v928_v41, 0 }
  0xee   : > { %1278 = vmatpush.bf16.msra.mxu2 %v1884_v1 }
  0xef   : > { %1251 = vmatpush.bf16.msra.mxu0 %v1872_v8 }
  0xf0   : > { %1292 = vmatpush.bf16.msra.mxu3 %v1948_v4 }
  0xf1   : > { %1264 = vmatpush.bf16.msra.mxu1 %v1944_v0  ;;  %v1083_v0 = vperm.slane %v1080_v58, 1 }
  0xf2   : > { %1279 = vmatpush.bf16.msra.mxu2 %v1876_v13 }
  0xf3   : > { %1252 = vmatpush.bf16.msra.mxu0 %v1864_v20 }
  0xf4   : > { %1293 = vmatpush.bf16.msra.mxu3 %v1940_v16 }
  0xf5   : > { %1265 = vmatpush.bf16.msra.mxu1 %v1936_v12 }
  0xf6   : > { %1280 = vmatpush.bf16.msra.mxu2 %v1868_v25 }
  0xf7   : > { %1253 = vmatpush.bf16.msra.mxu0 %v1856_v32 }
  0xf8   : > { %1294 = vmatpush.bf16.msra.mxu3 %v1932_v28 }
  0xf9   : > { %1266 = vmatpush.bf16.msra.mxu1 %v1928_v24 }
  0xfa   : > { %1281 = vmatpush.bf16.msra.mxu2 %v1860_v37 }
  0xfc   : > { %1295 = vmatpush.bf16.msra.mxu3 %v1924_v40 }
  0xfd   : > { %1267 = vmatpush.bf16.msra.mxu1 %v1920_v36 }
 0x15c   : > { %v890_v46 = vpop.f32.mrf.mxu0 }
 0x15d   : > { %v891_v49 = vadd.f32 %v2197_v48, %v890_v46 }
 0x164   : > { %v904_v50 = vpop.f32.mrf.mxu1  ;;  %v892_v52 = vpop.f32.mrf.mxu0 }
 0x165   : > { %v905_v51 = vadd.f32 %v904_v50, %v891_v49  ;;  %v893_v53 = vadd.f32 %v2197_v48, %v892_v52 }
 0x167   : > { %909 = vst [vmem:[%s2651_s29] sm:$0xff] %v905_v51 }
 0x16c   : > { %v906_v54 = vpop.f32.mrf.mxu1 }
 0x16d   : > { %v907_v55 = vadd.f32 %v906_v54, %v893_v53 }
 0x16f   : > { %910 = vst [vmem:[%s2651_s29 + $0x8] sm:$0xff] %v907_v55  ;;  %v911_v56 = vpack.c.bf16 %v907_v55, %v905_v51 }
 0x171   : > { %1022 = vmatmul.bf16.vlgmr.msrb.gmra.mxu2 %v911_v56  ;;  %1036 = vmatmul.bf16.vlgmr.msrb.gmra.mxu3 %v911_v56 }
 0x1f4   : > { %v1023_v42 = vpop.f32.mrf.mxu2  ;;  %v1037_v43 = vpop.f32.mrf.mxu3 }
 0x1f5   : > { %v1024_v46 = vadd.f32 %v1023_v42, %v930_v44  ;;  %v1038_v47 = vadd.f32 %v1037_v43, %v931_v45 }
 0x1f7   : > { %v1042_v52 = vmax.f32 %v1024_v46, 0.0  ;;  %v1043_v53 = vmax.f32 %v1038_v47, 0.0 }
 0x1fc   : > { %v1025_v48 = vpop.f32.mrf.mxu2  ;;  %v1039_v49 = vpop.f32.mrf.mxu3 }
 0x1fd   : > { %v1026_v50 = vadd.f32 %v1025_v48, %v930_v44  ;;  %v1040_v51 = vadd.f32 %v1039_v49, %v931_v45 }
 0x1ff   : > { %v1044_v54 = vmax.f32 %v1026_v50, 0.0  ;;  %v1045_v55 = vmax.f32 %v1040_v51, 0.0 }
 0x201   : > { %v1046_v56 = vpack.c.bf16 %v1044_v54, %v1042_v52  ;;  %v1047_v57 = vpack.c.bf16 %v1045_v55, %v1043_v53 }
 0x203   : > { %1254 = vmatmul.bf16.vlgmr.msra.gmra.mxu0 %v1046_v56  ;;  %1268 = vmatmul.bf16.vlgmr.msra.gmra.mxu1 %v1047_v57 }
 0x204   : > { %1282 = vmatmul.bf16.vlgmr.msra.gmra.mxu2 %v1046_v56  ;;  %1296 = vmatmul.bf16.vlgmr.msra.gmra.mxu3 %v1047_v57 }
 0x280   : > { %v1255_v60 = vpop.f32.mrf.mxu0  ;;  %v1269_v61 = vpop.f32.mrf.mxu1 }
 0x281   : > { %v1256_v62 = vadd.f32 %v1255_v60, %v1082_v59 }
 0x283   : > { %v1270_v63 = vadd.f32 %v1269_v61, %v1256_v62 }
 0x285   : > { %v1981_v1 = vmul.f32 -1.442695, %v1270_v63 }
 0x287   : > { %2198 = vpow2.f32 %v1981_v1  ;;  %v1283_v2 = vpop.f32.mrf.mxu2  ;;  %v1297_v4 = vpop.f32.mrf.mxu3 }
 0x288   : > { %v1284_v3 = vadd.f32 %v1283_v2, %v1083_v0  ;;  %v1257_v5 = vpop.f32.mrf.mxu0  ;;  %v1271_v8 = vpop.f32.mrf.mxu1 }
 0x289   : > { %v1258_v6 = vadd.f32 %v1257_v5, %v1082_v59 }
 0x28a   : > { %v1298_v7 = vadd.f32 %v1297_v4, %v1284_v3 }
 0x28b   : > { %v1272_v9 = vadd.f32 %v1271_v8, %v1258_v6 }
 0x28c   : > { %v1982_v10 = vmul.f32 -1.442695, %v1298_v7 }
 0x28d   : > { %v2199_v11 = vpop.eup %2198  ;;  %v1983_v12 = vmul.f32 -1.442695, %v1272_v9 }
 0x28e   : > { %v1314_v13 = vadd.f32 1.0, %v2199_v11  ;;  %2200 = vpow2.f32 %v1982_v10 }
 0x28f   : > { %2202 = vpow2.f32 %v1983_v12  ;;  %v1285_v14 = vpop.f32.mrf.mxu2  ;;  %v1299_v16 = vpop.f32.mrf.mxu3 }
 0x290   : > { %2204 = vrcp.f32 %v1314_v13  ;;  %v1286_v15 = vadd.f32 %v1285_v14, %v1083_v0  ;;  %v1329_v26 = vand.u32 2147483648, %v1314_v13  ;;  %v1327_v28 = vand.u32 2147483647, %v1314_v13 }
 0x291   : > { %vm1323_vm1 = vweird.f32 %v1314_v13 }
 0x292   : > { %v1300_v17 = vadd.f32 %v1299_v16, %v1286_v15  ;;  %v1330_v32 = vor.u32 1.1754944e-38, %v1329_v26  ;;  %vm1328_vm3 = vcmp.eq.f32.partialorder %v1327_v28, 8.507059e+37 }
 0x294   : > { %v2201_v18 = vpop.eup %2200  ;;  %v1984_v21 = vmul.f32 -1.442695, %v1300_v17 }
 0x295   : > { %v2203_v19 = vpop.eup %2202  ;;  %v1315_v20 = vadd.f32 1.0, %v2201_v18 }
 0x296   : > { %v2205_v22 = vpop.eup %2204  ;;  %v1316_v23 = vadd.f32 1.0, %v2203_v19 }
 0x297   : > { %v1319_v24 = vmul.f32 %v2205_v22, %v1314_v13  ;;  %2206 = vrcp.f32 %v1315_v20  ;;  %vm1324_vm0 = vweird.f32 %v2205_v22  ;;  %v1342_v40 = vand.u32 2147483647, %v1315_v20 }
 0x298   : > { %2208 = vrcp.f32 %v1316_v23  ;;  %vm1325_vm2 = vmor %vm1323_vm1, %vm1324_vm0  ;;  %v1344_v41 = vand.u32 2147483648, %v1315_v20  ;;  %v1359_v44 = vand.u32 2147483648, %v1316_v23  ;;  %v1357_v46 = vand.u32 2147483647, %v1316_v23 }
 0x299   : > { %v1320_v25 = vsub.f32 1.0, %v1319_v24  ;;  %2210 = vpow2.f32 %v1984_v21  ;;  %vm1338_vm6 = vweird.f32 %v1315_v20  ;;  %vm1353_vm8 = vweird.f32 %v1316_v23 }
 0x29a   : > { %v1345_v48 = vor.u32 1.1754944e-38, %v1344_v41  ;;  %vm1343_vm9 = vcmp.eq.f32.partialorder %v1342_v40, 8.507059e+37  ;;  %v1360_v51 = vor.u32 1.1754944e-38, %v1359_v44  ;;  %vm1358_vm11 = vcmp.eq.f32.partialorder %v1357_v46, 8.507059e+37 }
 0x29b   : > { %v1321_v27 = vmul.f32 %v2205_v22, %v1320_v25 }
 0x29d   : > { %v2207_v29 = vpop.eup %2206  ;;  %v1322_v30 = vadd.f32 %v2205_v22, %v1321_v27 }
 0x29e   : > { %v2209_v31 = vpop.eup %2208  ;;  %v1334_v33 = vmul.f32 %v2207_v29, %v1315_v20  ;;  %vm1339_vm4 = vweird.f32 %v2207_v29 }
 0x29f   : > { %v2211_v34 = vpop.eup %2210  ;;  %v1326_v35 = vsel %vm1325_vm2, %v2205_v22, %v1322_v30  ;;  %v1349_v36 = vmul.f32 %v2209_v31, %v1316_v23  ;;  %vm1354_vm5 = vweird.f32 %v2209_v31  ;;  %vm1340_vm7 = vmor %vm1338_vm6, %vm1339_vm4 }
 0x2a0   : > { %v1331_v37 = vsel %vm1328_vm3, %v1330_v32, %v1326_v35  ;;  %v1335_v38 = vsub.f32 1.0, %v1334_v33  ;;  %v1317_v39 = vadd.f32 1.0, %v2211_v34  ;;  %vm1355_vm10 = vmor %vm1353_vm8, %vm1354_vm5 }
 0x2a1   : > { %1378 = vst [vmem:[%s2662_s3] sm:$0xff] %v1331_v37  ;;  %v1350_v42 = vsub.f32 1.0, %v1349_v36 }
 0x2a2   : > { %v1336_v43 = vmul.f32 %v2207_v29, %v1335_v38  ;;  %2212 = vrcp.f32 %v1317_v39  ;;  %v1374_v58 = vand.u32 2147483648, %v1317_v39  ;;  %v1372_v60 = vand.u32 2147483647, %v1317_v39 }
 0x2a3   : > { %v1351_v45 = vmul.f32 %v2209_v31, %v1350_v42  ;;  %vm1368_vm13 = vweird.f32 %v1317_v39 }
 0x2a4   : > { %v1337_v47 = vadd.f32 %v2207_v29, %v1336_v43  ;;  %v1375_v62 = vor.u32 1.1754944e-38, %v1374_v58  ;;  %vm1373_vm15 = vcmp.eq.f32.partialorder %v1372_v60, 8.507059e+37 }
 0x2a5   : > { %v1352_v49 = vadd.f32 %v2209_v31, %v1351_v45 }
 0x2a6   : > { %v1341_v50 = vsel %vm1340_vm7, %v2207_v29, %v1337_v47 }
 0x2a7   : > { %v1346_v52 = vsel %vm1343_vm9, %v1345_v48, %v1341_v50  ;;  %v1356_v53 = vsel %vm1355_vm10, %v2209_v31, %v1352_v49 }
 0x2a8   : > { %v2213_v54 = vpop.eup %2212  ;;  %1379 = vst [vmem:[%s2662_s3 + $0x8] sm:$0xff] %v1346_v52  ;;  %v1361_v55 = vsel %vm1358_vm11, %v1360_v51, %v1356_v53 }
 0x2a9   : > { %1380 = vst [vmem:[%s2662_s3 + $0x10] sm:$0xff] %v1361_v55  ;;  %v1364_v56 = vmul.f32 %v2213_v54, %v1317_v39  ;;  %vm1369_vm12 = vweird.f32 %v2213_v54 }
 0x2aa   : > { %vm1370_vm14 = vmor %vm1368_vm13, %vm1369_vm12 }
 0x2ab   : > { %v1365_v57 = vsub.f32 1.0, %v1364_v56 }
 0x2ad   : > { %v1366_v59 = vmul.f32 %v2213_v54, %v1365_v57 }
 0x2af   : > { %v1367_v61 = vadd.f32 %v2213_v54, %v1366_v59  ;;  %1394 = sbr.rel (!%p2571_p5) target bundleno = 724 (0x2d4), region = 76 }
 0x2b1   : > { %v1371_v63 = vsel %vm1370_vm14, %v2213_v54, %v1367_v61 }
 0x2b2   : > { %v1376_v0 = vsel %vm1373_vm15, %v1375_v62, %v1371_v63 }
 0x2b3   : > { %1381 = vst [vmem:[%s2662_s3 + $0x18] sm:$0xff] %v1376_v0 }
 0x2b4   : > { %s2820_s19 = smov (!%p1397_p0, %s1396_s19), 2 }
 0x2b5   : > { %s2102_s22 = sshll.u32 %s2820_s19, 4 }
 0x2b6   : > { %s1401_s24 = ssub.s32 32, %s2102_s22 }
 0x2b7   : > { %s1402_s25 = sshll.u32 %s1401_s24, 4 }
 0x2b8   : > { %1403 = vsyncadd %s2792_s13, %s1402_s25  ;;  %p2678_p1 = scmp.ne.s32.totalorder %s2102_s22, 0  ;;  %s2104_s26 = sshll.u32 %s2554_s17, 5 }
 0x2b9   : > { %s1407_s18 = scalar_lea.hbm %s2784_s9, %s2104_s26  ;;  %s1409_s28 = sshll.u32 %s2662_s3, 4  ;;  %s2687_s28 = int_to_ptr.vmem [resolvable:$true] %s1409_s28 }
 0x2ba   : > { %s1411_s30 = sshll.u32 %s1407_s18, 4  ;;  %s2791_s21 = sshll.u32 %s2820_s19, 8  ;;  %s2689_s30 = int_to_ptr.hbm [resolvable:$true] %s1411_s30 }
 0x2bb   : > { %s2334_s24 = sshra.s32 %s2687_s28, 4  ;;  %s2336_s22 = sshrl.u32 %s2791_s21, 4  ;;  %s2335_s24 = int_to_ptr.vmem [resolvable:$true] %s2334_s24 }
 0x2bc   : > { %s2341_s25 = scalar_lea.vmem %s2335_s24, %s2336_s22  ;;  %s2472_s15 = smov [#allocation10]  }
 0x2bd   : > { %p2342_p2 = scmp.ne.s32.totalorder %s2335_s24, %s2341_s25  ;;  %s2345_s27 = scalar_lea.vmem %s2472_s15, 64 }
 0x2be   : > { %p2347_p7 = scmp.lt.s32.totalorder %s2345_s27, %s2341_s25 }
 0x2bf   : > { %p2343_p3 = pnand %p2342_p2, %p2678_p1 }
 0x2c1   : > { %p2344_p4 = pneg %p2343_p3 }
 0x2c3   : > { %p2349_p8 = pnand %p2347_p7, %p2344_p4 }
 0x2c5   : > { %2352 = shalt.err (!%p2349_p8)
}
 0x2c6   : > { %s2353_s3 = sshra.s32 %s2689_s30, 4  ;;  %s2364_s24 = scalar_lea.hbm %s2784_s9, 48  ;;  %s2354_s3 = int_to_ptr.hbm [resolvable:$true] %s2353_s3 }
 0x2c7   : > { %s2360_s26 = scalar_lea.hbm %s2354_s3, %s2336_s22  ;;  %p2365_p12 = scmp.lt.s32.totalorder %s2354_s3, %s2784_s9 }
 0x2c8   : > { %p2361_p9 = scmp.ne.s32.totalorder %s2354_s3, %s2360_s26  ;;  %p2366_p13 = scmp.lt.s32.totalorder %s2364_s24, %s2360_s26 }
 0x2ca   : > { %p2362_p10 = pnand %p2361_p9, %p2678_p1  ;;  %p2367_p0 = por %p2366_p13, %p2365_p12 }
 0x2cc   : > { %p2363_p11 = pneg %p2362_p10 }
 0x2ce   : > { %p2368_p2 = pnand %p2367_p0, %p2363_p11 }
 0x2d0   : > { %2371 = shalt.err (!%p2368_p2)
}
 0x2d1   : > { %s2473_s15 = smov 256   ;;  %s2474_s22 = smov 16  }
 0x2d2   : > { %s2807_s25 = scalar_lea.sflag [#allocation4], %s2645_s11  ;;  %s2808_s27 = sshll.u32 %s2820_s19, 8 }
 0x2d3   : > { %1417 = dma.vmem_to_hbm [thread:$0]  (%p2678_p1), %s2687_s28, %s2808_s27, %s2689_s30, %s2807_s25, %s2473_s15, %s2473_s15, %s2474_s22  }
 0x2d4 PF: > { %1420 = sbr.rel (!%p2571_p5) target bundleno = 761 (0x2f9), region = 80  ;;  %s1422_s13 = ssub.s32 (%p2571_p5), 3, %s2629_s1 }
 0x2d5   : > { %p1423_p3 = scmp.lt.s32.totalorder (%p2571_p5), %s1422_s13, 2  ;;  %s2809_s12 = scalar_lea.sflag (%p2571_p5), [#allocation12], %s2645_s11 }
 0x2d9   : > { %s2822_s13 = smov (!%p1423_p3, %s1422_s13), 2 }
 0x2da   : > { %s1996_s21 = sshll.u32 %s2822_s13, 3 }
 0x2db   : > { %s1426_s3 = ssub.s32 16, %s1996_s21 }
 0x2dc   : > { %s1427_s26 = sshll.u32 %s1426_s3, 4 }
 0x2dd   : > { %1428 = vsyncadd %s2809_s12, %s1427_s26  ;;  %p2722_p1 = scmp.ne.s32.totalorder %s1996_s21, 0  ;;  %s2105_s23 = sshll.u32 %s2554_s17, 4 }
 0x2de   : > { %s1431_s28 = scalar_lea.hbm %s2785_s10, %s2105_s23  ;;  %s1433_s30 = sshll.u32 %s2651_s29, 4  ;;  %s2731_s30 = int_to_ptr.vmem [resolvable:$true] %s1433_s30 }
 0x2df   : > { %s1435_s18 = sshll.u32 %s1431_s28, 4  ;;  %s2000_s24 = sshll.u32 %s2822_s13, 7  ;;  %s2733_s18 = int_to_ptr.hbm [resolvable:$true] %s1435_s18 }
 0x2e0   : > { %s2373_s15 = sshra.s32 %s2731_s30, 4  ;;  %s2375_s22 = sshrl.u32 %s2000_s24, 4  ;;  %s2374_s15 = int_to_ptr.vmem [resolvable:$true] %s2373_s15 }
 0x2e1   : > { %s2380_s25 = scalar_lea.vmem %s2374_s15, %s2375_s22  ;;  %s2475_s17 = smov [#allocation11]  }
 0x2e2   : > { %p2381_p5 = scmp.ne.s32.totalorder %s2374_s15, %s2380_s25  ;;  %s2384_s27 = scalar_lea.vmem %s2475_s17, 32 }
 0x2e3   : > { %p2386_p8 = scmp.lt.s32.totalorder %s2384_s27, %s2380_s25 }
 0x2e4   : > { %p2382_p4 = pnand %p2381_p5, %p2722_p1 }
 0x2e6   : > { %p2383_p7 = pneg %p2382_p4 }
 0x2e8   : > { %p2388_p9 = pnand %p2386_p8, %p2383_p7 }
 0x2ea   : > { %2391 = shalt.err (!%p2388_p9)
}
 0x2eb   : > { %s2392_s29 = sshra.s32 %s2733_s18, 4  ;;  %s2403_s12 = scalar_lea.hbm %s2785_s10, 24  ;;  %s2393_s29 = int_to_ptr.hbm [resolvable:$true] %s2392_s29 }
 0x2ec   : > { %s2399_s21 = scalar_lea.hbm %s2393_s29, %s2375_s22  ;;  %p2404_p13 = scmp.lt.s32.totalorder %s2393_s29, %s2785_s10 }
 0x2ed   : > { %p2400_p10 = scmp.ne.s32.totalorder %s2393_s29, %s2399_s21  ;;  %p2405_p0 = scmp.lt.s32.totalorder %s2403_s12, %s2399_s21 }
 0x2ef   : > { %p2401_p11 = pnand %p2400_p10, %p2722_p1  ;;  %p2406_p2 = por %p2405_p0, %p2404_p13 }
 0x2f1   : > { %p2402_p12 = pneg %p2401_p11 }
 0x2f3   : > { %p2407_p3 = pnand %p2406_p2, %p2402_p12 }
 0x2f5   : > { %2410 = shalt.err (!%p2407_p3)
}
 0x2f6   : > { %s2476_s20 = smov 128   ;;  %s2477_s28 = smov 8  }
 0x2f7   : > { %s2811_s15 = scalar_lea.sflag [#allocation12], %s2645_s11 }
 0x2f8   : > { %1441 = dma.vmem_to_hbm [thread:$0]  (%p2722_p1), %s2731_s30, %s2000_s24, %s2733_s18, %s2811_s15, %s2476_s20, %s2476_s20, %s2477_s28  }
 0x2f9 PF: > { %s2812_s22 = sld [smem:[#allocation18_spill]]  ;;  %p2152_p5 = scmp.ge.s32.totalorder %s2462_s16, 2 }
 0x2fb   : > { %p2138_p4 = pnand %p2152_p5, %p2575_p6 }
 0x2fd   : > { %p2139_p7 = pneg %p2138_p4 }
 0x2ff   : > { %s1450_s17 = sand.u32 1, %s2812_s22  }
 0x300   : > { %s1451_s27 = scalar_lea.sflag [#allocation4], %s1450_s17 }
 0x301   : > { %2441 = dma.done.wait (%p2139_p7), %s1451_s27, 512  }
 0x302   : > { %2443 = vsyncadd (%p2139_p7), %s1451_s27, 4294966784  ;;  %s1461_s29 = scalar_lea.sflag [#allocation12], %s1450_s17 }
 0x303   : > { %2445 = dma.done.wait (%p2139_p7), %s1461_s29, 256  }
 0x304   : > { %2447 = vsyncadd (%p2139_p7), %s1461_s29, 4294967040  ;;  %s2814_s16 = sld [smem:[#allocation20_spill]]  ;;  %s2817_s13 = smov %s2454_s14 }
 0x305   : > { %s2815_s11 = sld [smem:[#allocation19_spill]] }
 0x306   : > { %s2816_s15 = sld [smem:[#allocation21_spill]] }
 0x30a   : > { %p27_p1 = scmp.ge.s32.totalorder %s2814_s16, 4  }
 0x30b   : > { %s2818_s14 = smov %s2815_s11 }
 0x30c   :  { %29 = sbr.rel (!%p27_p1) target bundleno = 11 (0xb), region = 125 }
 0x311   :  { %1467 = vsyncpa [#allocation3], 1 }
 0x312   :  { %1469 = vsyncpa [#allocation3 + $0x1], 1 }
 0x313   :  { %1470 = vsyncpa [#allocation6], 1 }
 0x314   :  { %1471 = vsyncpa [#allocation9], 1 }
 0x315   :  { %1472 = vsyncpa [#allocation4], 1 }
 0x316   :  { %1474 = vsyncpa [#allocation4 + $0x1], 1 }
 0x317   :  { %1475 = vsyncpa [#allocation12], 1 }
 0x318   :  { %1477 = vsyncpa [#allocation12 + $0x1], 1 }

</bundles_post_ra>
